<compile_context>
chip_gen: v7x
topology: tpu7x:2x2x1
jax: 0.10.0
libtpu: 0.0.40
codegen_flags: <defaults>
</compile_context>

<pallas_src>
import jax
import jax.numpy as jnp
from jax.experimental import pallas as pl
from jax.experimental.pallas import tpu as pltpu

_LANE = 128
_ROW_VMEM_BUDGET = 20 * 1024 * 1024      # bytes for double-buffered blocks (row path)

_TILE_CFG = None


def _tile_config():
    """(block_rows, vmem_limit_bytes) chosen per TPU generation."""
    global _TILE_CFG
    if _TILE_CFG is None:
        try:
            cap = pltpu.get_tpu_info().vmem_capacity_bytes
        except Exception:
            cap = 64 * 1024 * 1024                       # assume v7x-sized VMEM
        if cap >= 96 * 1024 * 1024:                      # v5e / v6e: 128 MiB physical
            _TILE_CFG = (8192, 64 * 1024 * 1024)
        else:                                            # v7x: 64 MiB physical
            _TILE_CFG = (4096, 48 * 1024 * 1024)
    return _TILE_CFG


def _sigmoid_ce(x, z):
    # stable BCE-with-logits: max(x,0) - x*z + log1p(exp(-|x|))
    return jnp.maximum(x, 0.0) - x * z + jnp.log1p(jnp.exp(-jnp.abs(x)))


def _ce_compact_kernel(x_ref, z_ref, w_ref, e_ref, o_ref):
    """Lane-dense path, C | 128.  w is a compact (rows, 128//C) per-anchor stream;
    e is a resident (128//C, 128) expansion matrix that fans the weight out across
    each anchor's C lanes and applies the class mask -- on the idle MXU."""
    x = x_ref[...].astype(jnp.float32)
    z = z_ref[...].astype(jnp.float32)
    w = jnp.dot(w_ref[...], e_ref[...], preferred_element_type=jnp.float32)
    o_ref[...] = (_sigmoid_ce(x, z) * w).astype(o_ref.dtype)


def _ce_dense_kernel(x_ref, z_ref, w_ref, o_ref):
    """Lane-dense path, general C.  w already folds weights (* class mask)."""
    x = x_ref[...].astype(jnp.float32)
    z = z_ref[...].astype(jnp.float32)
    w = w_ref[...].astype(jnp.float32)
    o_ref[...] = (_sigmoid_ce(x, z) * w).astype(o_ref.dtype)


def _ce_row_kernel(x_ref, z_ref, w_ref, m_ref, o_ref):
    """Legacy row path: blocks are (rows, C); w is (rows, 1), m is (1, C)."""
    x = x_ref[...].astype(jnp.float32)
    z = z_ref[...].astype(jnp.float32)
    w = w_ref[...]                                   # (rows, 1) f32
    m = m_ref[...]                                   # (1, C)    f32
    o_ref[...] = (_sigmoid_ce(x, z) * (w * m)).astype(o_ref.dtype)


class WeightedSigmoidClassificationLoss:
    """Sigmoid cross entropy classification loss (Pallas TPU kernel)."""

    def __init__(self, logit_scale=1.0, loss_weight=1.0, name=""):
        self.name = name
        self._loss_weight = loss_weight          # stored but not applied (matches torch forward)
        self._logit_scale = logit_scale          # stored but not applied (matches torch forward)

    def __call__(self, prediction_tensor, target_tensor, weights, class_indices=None):
        B, A, C = prediction_tensor.shape
        dtype = prediction_tensor.dtype
        M = B * A
        N = M * C

        if class_indices is not None:
            mask = jnp.zeros((C,), jnp.float32).at[class_indices].set(1.0)
        else:
            mask = None

        if C > 0 and N % _LANE == 0:
            out = self._flat_call(prediction_tensor, target_tensor, weights, mask,
                                  B, A, C, dtype)
        else:
            out = self._row_call(prediction_tensor, target_tensor, weights, mask,
                                 M, C, dtype)
        return out.reshape(B, A, C)

    # ---- lane-dense path: fold C into the 128-lane axis -----------------------
    def _flat_call(self, pred, targ, weights, mask, B, A, C, dtype):
        M = B * A
        N = M * C
        R = N // _LANE
        rows_cfg, vmem_limit = _tile_config()
        tr = min(rows_cfg, R)
        grid = (pl.cdiv(R, tr),)                     # ragged tail masked by Pallas
        itemsize = jnp.dtype(dtype).itemsize

        x = pred.reshape(R, _LANE)                   # free reshapes (row-major)
        z = targ.reshape(R, _LANE)
        spec = pl.BlockSpec((tr, _LANE), lambda i: (i, 0))
        cparams = pltpu.CompilerParams(
            dimension_semantics=("parallel",),       # independent blocks -> megacore/2-TC
            vmem_limit_bytes=vmem_limit)

        if _LANE % C == 0:
            # Compact per-anchor weight stream (4 B/anchor HBM read) + tiny resident
            # expansion matrix E with E[k, k*C + c] = mask[c].
            K = _LANE // C
            w = weights.astype(jnp.float32).reshape(R, K)
            lane = jnp.arange(_LANE)
            expand = (lane[None, :] // C == jnp.arange(K)[:, None]).astype(jnp.float32)
            if mask is not None:
                expand = expand * jnp.tile(mask, K)[None, :]
            cost = pl.CostEstimate(flops=6 * N + 2 * R * _LANE * K,
                                   transcendentals=2 * N,
                                   bytes_accessed=3 * N * itemsize + 4 * M)
            return pl.pallas_call(
                _ce_compact_kernel,
                out_shape=jax.ShapeDtypeStruct((R, _LANE), dtype),
                grid_spec=pltpu.PrefetchScalarGridSpec(
                    num_scalar_prefetch=0,
                    grid=grid,
                    in_specs=[spec, spec,
                              pl.BlockSpec((tr, K), lambda i: (i, 0)),
                              pl.BlockSpec((K, _LANE), lambda i: (0, 0))],  # resident
                    out_specs=spec),
                compiler_params=cparams,
                cost_estimate=cost,
            )(x, z, w, expand)

        # C does not divide 128: keep a dense folded weight stream, but in the
        # logits dtype (halves the read for bf16) and skip the mask multiply when
        # class_indices is None.
        w_dtype = dtype if itemsize < 4 else jnp.float32
        wf = weights.astype(jnp.float32)[..., None]
        if mask is not None:
            wf = wf * mask
        w = jnp.broadcast_to(wf, (B, A, C)).astype(w_dtype).reshape(R, _LANE)
        cost = pl.CostEstimate(
            flops=6 * N, transcendentals=2 * N,
            bytes_accessed=N * (3 * itemsize + jnp.dtype(w_dtype).itemsize))
        return pl.pallas_call(
            _ce_dense_kernel,
            out_shape=jax.ShapeDtypeStruct((R, _LANE), dtype),
            grid_spec=pltpu.PrefetchScalarGridSpec(
                num_scalar_prefetch=0,
                grid=grid,
                in_specs=[spec, spec, spec],
                out_specs=spec),
            compiler_params=cparams,
            cost_estimate=cost,
        )(x, z, w)

    # ---- legacy row path: [B*A, C], only when B*A*C % 128 != 0 -----------------
    def _row_call(self, pred, targ, weights, mask, M, C, dtype):
        _, vmem_limit = _tile_config()
        x = pred.reshape(M, C)
        z = targ.reshape(M, C)
        w = weights.reshape(M, 1).astype(jnp.float32)
        m = (mask if mask is not None else jnp.ones((C,), jnp.float32)).reshape(1, C)

        # Per-row VMEM bytes: 3 double-buffered (rows, C) streams (pred/targ/out,
        # counted at 4 B/elem) plus the (rows, 1) weight stream, which Mosaic
        # lane-pads to (rows, 128).
        per_row_bytes = 4 * (6 * C + 2 * _LANE)
        tr = max(32, (_ROW_VMEM_BUDGET // per_row_bytes) // 32 * 32)
        # TODO(synk): for extremely large C (block (32, C) alone exceeding VMEM),
        # also tile the class axis.
        if M <= tr:
            tr = M                                   # single full-extent block
        grid = (pl.cdiv(M, tr),)
        in_bytes = jnp.dtype(dtype).itemsize
        N = M * C
        cost = pl.CostEstimate(flops=6 * N, transcendentals=2 * N,
                               bytes_accessed=3 * N * in_bytes + 4 * (M + C))

        return pl.pallas_call(
            _ce_row_kernel,
            out_shape=jax.ShapeDtypeStruct((M, C), dtype),
            grid_spec=pltpu.PrefetchScalarGridSpec(
                num_scalar_prefetch=0,
                grid=grid,
                in_specs=[
                    pl.BlockSpec((tr, C), lambda i: (i, 0)),
                    pl.BlockSpec((tr, C), lambda i: (i, 0)),
                    pl.BlockSpec((tr, 1), lambda i: (i, 0)),
                    pl.BlockSpec((1, C), lambda i: (0, 0)),   # class mask: resident
                ],
                out_specs=pl.BlockSpec((tr, C), lambda i: (i, 0)),
            ),
            compiler_params=pltpu.CompilerParams(
                dimension_semantics=("parallel",),
                vmem_limit_bytes=vmem_limit),
            cost_estimate=cost,
        )(x, z, w, m)


def _reference(pred, targ, w, class_indices=None):
    """Pure-JAX reference for correctness checking."""
    w = w[..., None].astype(jnp.float32)
    if class_indices is not None:
        C = pred.shape[2]
        m = jnp.zeros((C,), jnp.float32).at[class_indices].set(1.0)
        w = w * m
    x = pred.astype(jnp.float32)
    z = targ.astype(jnp.float32)
    ce = jnp.maximum(x, 0.0) - x * z + jnp.log1p(jnp.exp(-jnp.abs(x)))
    return (ce * w).astype(pred.dtype)


if __name__ == "__main__":
    key = jax.random.PRNGKey(0)
    k1, k2, k3, k4, k5 = jax.random.split(key, 5)

    loss_fn = WeightedSigmoidClassificationLoss(logit_scale=1.0, loss_weight=1.0)

    def check(pred, targ, w, ci, tag, tol=1e-5):
        out = jax.block_until_ready(loss_fn(pred, targ, w, class_indices=ci))
        ref = _reference(pred, targ, w, class_indices=ci)
        assert out.shape == pred.shape, tag
        ok = jnp.allclose(out.astype(jnp.float32), ref.astype(jnp.float32),
                          atol=tol, rtol=tol)
        assert ok, f"mismatch: {tag}"

    # ---- C divides 128 -> compact-weight lane-dense path ----------------------
    B, A, C = 2, 16, 8
    pred = jax.random.normal(k1, (B, A, C), dtype=jnp.float32)
    targ = jax.nn.one_hot(jax.random.randint(k2, (B, A), 0, C), C, dtype=jnp.float32)
    w = jax.random.uniform(k3, (B, A), dtype=jnp.float32)
    check(pred, targ, w, None, "compact/no-mask")
    check(pred, targ, w, jnp.array([0, 2, 5], jnp.int32), "compact/mask")
    check(pred.astype(jnp.bfloat16), targ.astype(jnp.bfloat16), w, None,
          "compact/bf16", tol=2e-2)

    # ---- C=40 (N % 128 == 0, C not dividing 128) -> dense-weight flat path ----
    B2, A2, C2 = 2, 16, 40
    pred2 = jax.random.normal(k4, (B2, A2, C2), dtype=jnp.float32)
    targ2 = jax.nn.one_hot(jax.random.randint(k2, (B2, A2), 0, C2), C2, dtype=jnp.float32)
    w2 = jax.random.uniform(k3, (B2, A2), dtype=jnp.float32)
    check(pred2, targ2, w2, jnp.array([1, 7], jnp.int32), "dense-flat/mask")
    check(pred2, targ2, w2, None, "dense-flat/no-mask")

    # ---- N % 128 != 0 -> legacy row path ---------------------------------------
    B3, A3, C3 = 2, 10, 7
    pred3 = jax.random.normal(k5, (B3, A3, C3), dtype=jnp.float32)
    targ3 = jax.nn.one_hot(jax.random.randint(k2, (B3, A3), 0, C3), C3, dtype=jnp.float32)
    w3 = jax.random.uniform(k3, (B3, A3), dtype=jnp.float32)
    check(pred3, targ3, w3, jnp.array([0, 3], jnp.int32), "row/mask")

    print("KERNEL_OK")
</pallas_src>

<mosaic_0001>
module attributes {stable_mosaic.version = 11 : i64} {
  func.func @_ce_compact_kernel(%arg0: i32, %arg1: memref<2x128xf32, #tpu.memory_space<vmem>>, %arg2: memref<2x128xf32, #tpu.memory_space<vmem>>, %arg3: memref<2x16xf32, #tpu.memory_space<vmem>>, %arg4: memref<16x128xf32, #tpu.memory_space<vmem>>, %arg5: memref<2x128xf32, #tpu.memory_space<vmem>>) attributes {dimension_semantics = [#tpu.dimension_semantics<parallel>], iteration_bounds = array<i64: 1>, scalar_prefetch = 0 : i64, scratch_operands = 0 : i64, tpu.core_type = #tpu.core_type<tc>, window_params = [{transform_indices = @transform_0, window_bounds = array<i64: 2, 128>}, {transform_indices = @transform_1, window_bounds = array<i64: 2, 128>}, {transform_indices = @transform_2, window_bounds = array<i64: 2, 16>}, {pipeline_mode = #tpu.pipeline_mode<synchronous>, transform_indices = @transform_3, window_bounds = array<i64: 16, 128>}, {transform_indices = @transform_4, window_bounds = array<i64: 2, 128>}]} {
    %c0 = arith.constant 0 : index
    %c0_0 = arith.constant 0 : index
    %0 = vector.load %arg1[%c0, %c0_0] : memref<2x128xf32, #tpu.memory_space<vmem>>, vector<2x128xf32>
    %c0_1 = arith.constant 0 : index
    %c0_2 = arith.constant 0 : index
    %1 = vector.load %arg2[%c0_1, %c0_2] : memref<2x128xf32, #tpu.memory_space<vmem>>, vector<2x128xf32>
    %c0_3 = arith.constant 0 : index
    %c0_4 = arith.constant 0 : index
    %2 = vector.load %arg3[%c0_3, %c0_4] : memref<2x16xf32, #tpu.memory_space<vmem>>, vector<2x16xf32>
    %c0_5 = arith.constant 0 : index
    %c0_6 = arith.constant 0 : index
    %3 = vector.load %arg4[%c0_5, %c0_6] : memref<16x128xf32, #tpu.memory_space<vmem>>, vector<16x128xf32>
    %cst = arith.constant dense<0.000000e+00> : vector<2x128xf32>
    %4 = tpu.matmul %2, %3, %cst {dimension_numbers = #tpu.dot_dimension_numbers<[1], [0], [0], [1], [0, 0, 1, 1], [], []>} : vector<2x16xf32>, vector<16x128xf32>, vector<2x128xf32> -> vector<2x128xf32>
    %cst_7 = arith.constant 0.000000e+00 : f32
    %5 = vector.broadcast %cst_7 : f32 to vector<2x128xf32>
    %6 = arith.maximumf %0, %5 : vector<2x128xf32>
    %7 = arith.mulf %0, %1 : vector<2x128xf32>
    %8 = arith.subf %6, %7 : vector<2x128xf32>
    %9 = math.absf %0 : vector<2x128xf32>
    %cst_8 = arith.constant 0.000000e+00 : f32
    %10 = vector.broadcast %cst_8 : f32 to vector<2x128xf32>
    %11 = arith.subf %10, %9 : vector<2x128xf32>
    %12 = math.exp %11 : vector<2x128xf32>
    %13 = math.log1p %12 : vector<2x128xf32>
    %14 = arith.addf %8, %13 : vector<2x128xf32>
    %15 = arith.mulf %14, %4 : vector<2x128xf32>
    %c0_9 = arith.constant 0 : index
    %c0_10 = arith.constant 0 : index
    %16 = vector.load %arg5[%c0_9, %c0_10] : memref<2x128xf32, #tpu.memory_space<vmem>>, vector<2x128xf32>
    tpu.vector_store %arg5[%c0_9, %c0_10], %15 {strides = array<i32>} : memref<2x128xf32, #tpu.memory_space<vmem>>, vector<2x128xf32>,
    return
  }
  func.func @transform_0(%arg0: i32) -> (i32, i32) {
    %c0_i32 = arith.constant 0 : i32
    %c0_i32_0 = arith.constant 0 : i32
    return %arg0, %c0_i32 : i32, i32
  }
  func.func @transform_1(%arg0: i32) -> (i32, i32) {
    %c0_i32 = arith.constant 0 : i32
    %c0_i32_0 = arith.constant 0 : i32
    return %arg0, %c0_i32 : i32, i32
  }
  func.func @transform_2(%arg0: i32) -> (i32, i32) {
    %c0_i32 = arith.constant 0 : i32
    %c0_i32_0 = arith.constant 0 : i32
    return %arg0, %c0_i32 : i32, i32
  }
  func.func @transform_3(%arg0: i32) -> (i32, i32) {
    %c0_i32 = arith.constant 0 : i32
    %c0_i32_0 = arith.constant 0 : i32
    %c0_i32_1 = arith.constant 0 : i32
    return %c0_i32, %c0_i32_0 : i32, i32
  }
  func.func @transform_4(%arg0: i32) -> (i32, i32) {
    %c0_i32 = arith.constant 0 : i32
    %c0_i32_0 = arith.constant 0 : i32
    return %arg0, %c0_i32 : i32, i32
  }
}

</mosaic_0001>

<bundles_post_ra>
// kernel: tpu_custom_call.1
= control target key start
LH: loop header
LB: loop body
LE: loop exit
PB: predicated region body
PF: predicated region fallthrough
CT: control target
= control target key end

     0   :  { %9 = vsyncpa [#allocation3], 0  ;;  %s338_s0 = inlined_call_operand.hbm [shape: f32[2,128], index: 0, kind: input, shape index: {}]   ;;  %s339_s1 = inlined_call_operand.vmem [shape: f32[2,128], index: 1, kind: input, shape index: {}]   ;;  %s340_s2 = inlined_call_operand.vmem [shape: f32[2,16], index: 2, kind: input, shape index: {}]   ;;  %s341_s3 = inlined_call_operand.hbm [shape: f32[16,128], index: 3, kind: input, shape index: {}]   ;;  %s342_s4 = inlined_call_operand.hbm [shape: f32[2,128], index: 4, kind: output, shape index: {}]  }
   0x1   :  { %10 = vsyncpa [#allocation6], 0 }
   0x2   :  { %11 = vsyncpa [#allocation4], 0  ;;  %s256_s15 = smov [#allocation2]   ;;  %s257_s17 = smov [#allocation5]  }
   0x3   :  { %s18_s16 = sshll.u32 %s256_s15, 4  ;;  %s31_s18 = sshll.u32 %s257_s17, 4  ;;  %s19_s16 = int_to_ptr.vmem [resolvable:$true] %s18_s16  ;;  %s289_s18 = int_to_ptr.vmem [resolvable:$true] %s31_s18 }
   0x4   :  { %s184_s21 = scalar_lea.hbm %s338_s0, 32 }
   0x5   :  { %p185_p0 = scmp.ne.s32.totalorder %s338_s0, %s184_s21  ;;  %p188_p1 = scmp.lt.u32.totalorder %s184_s21, %s338_s0 }
   0x7   :  { %p190_p2 = pnand %p188_p1, %p185_p0 }
   0x9   :  { %193 = shalt.err (!%p190_p2)
}
   0xa   :  { %s194_s26 = scalar_lea.vmem %s19_s16, 32  ;;  %p199_p4 = scmp.lt.s32.totalorder %s19_s16, %s19_s16 }
   0xb   :  { %p195_p3 = scmp.ne.s32.totalorder %s19_s16, %s194_s26  ;;  %p200_p5 = scmp.lt.s32.totalorder %s194_s26, %s194_s26 }
   0xd   :  { %p201_p6 = por %p200_p5, %p199_p4 }
   0xf   :  { %p202_p7 = pnand %p201_p6, %p195_p3 }
  0x11   :  { %205 = shalt.err (!%p202_p7)
}
  0x12   :  { %21 = dma.hbm_to_vmem [thread:$0]  %s338_s0, 32, %s19_s16, [#allocation3]  }
  0x13   :  { %s206_s5 = scalar_lea.hbm %s341_s3, 256 }
  0x14   :  { %p207_p8 = scmp.ne.s32.totalorder %s341_s3, %s206_s5  ;;  %p210_p9 = scmp.lt.u32.totalorder %s206_s5, %s341_s3 }
  0x16   :  { %p212_p10 = pnand %p210_p9, %p207_p8 }
  0x18   :  { %215 = shalt.err (!%p212_p10)
}
  0x19   :  { %s216_s10 = scalar_lea.vmem %s289_s18, 256  ;;  %p221_p12 = scmp.lt.s32.totalorder %s289_s18, %s289_s18 }
  0x1a   :  { %p217_p11 = scmp.ne.s32.totalorder %s289_s18, %s216_s10  ;;  %p222_p13 = scmp.lt.s32.totalorder %s216_s10, %s216_s10 }
  0x1c   :  { %p223_p0 = por %p222_p13, %p221_p12 }
  0x1e   :  { %p224_p1 = pnand %p223_p0, %p217_p11 }
  0x20   :  { %227 = shalt.err (!%p224_p1)
}
  0x21   :  { %s258_s0 = smov 128   ;;  %s259_s11 = smov 8  }
  0x22   :  { %37 = dma.hbm_to_vmem [thread:$0]  %s341_s3, 256, %s289_s18, [#allocation6], %s258_s0, %s258_s0, %s259_s11  }
  0x23   :  { %250 = dma.done.wait [#allocation3], 32  }
  0x24   :  { %251 = vsyncadd [#allocation3], 4294967264 }
  0x25   :  { %252 = dma.done.wait [#allocation6], 256  }
  0x26   :  { %253 = vsyncadd [#allocation6], 4294967040  ;;  %v260_v0 = vmov 0.0|0.0   ;;  %vm261_vm0 = vmmov 0   ;;  %v262_v1 = vmov 0.0   ;;  %v47_v2 = vld [vmem:[#allocation5] sm:$0xff] }
  0x27   :  { %169 = vmatprep.subr.bf16.mxu0 %v260_v0  ;;  %166 = vmatprep.mubr.msk.f32.mxu0 %vm261_vm0, %v262_v1  ;;  %v48_v3 = vld [vmem:[#allocation5 + $0x8] sm:$0xff]  ;;  %v46_v5 = vld [vmem:[%s340_s2] sm:$0x3]  ;;  %vm49_vm1 = vcmask 130048   ;;  %s263_s2 = smov [#allocation7]  }
  0x28   :  { %v170_v4 = vpack.c.bf16 %v48_v3, %v47_v2  ;;  %v44_v6 = vld [vmem:[#allocation2] sm:$0x3]  ;;  %s148_s17 = sshll.u32 %s263_s2, 4  ;;  %s149_s17 = int_to_ptr.vmem [resolvable:$true] %s148_s17 }
  0x29   :  { %v126_v7 = vand.u32 2147483647, %v44_v6  ;;  %v45_v13 = vld [vmem:[%s339_s1] sm:$0x3]  ;;  %v123_v17 = vmax.f32 %v44_v6, 0.0  ;;  %s228_s18 = scalar_lea.vmem %s149_s17, 32  ;;  %p233_p3 = scmp.lt.s32.totalorder %s149_s17, %s149_s17 }
  0x2a   :  { %171 = vmatpush3.bf16.msra.mxu0 %v170_v4  ;;  %v124_v18 = vmul.f32 %v45_v13, %v44_v6  ;;  %p229_p2 = scmp.ne.s32.totalorder %s149_s17, %s228_s18  ;;  %p234_p4 = scmp.lt.s32.totalorder %s228_s18, %s228_s18 }
  0x2b   :  { %v127_v8 = vsub.f32 0.0, %v126_v7 }
  0x2c   :  { %v125_v21 = vsub.f32 %v123_v17, %v124_v18  ;;  %p235_p5 = por %p234_p4, %p233_p3 }
  0x2d   :  { %167 = vmatmul.mubr.msk.f32.vlgmr.msra.gmra.mrb[0].mxu0 %vm49_vm1, %v46_v5  ;;  %v128_v9 = vmul.f32 1.442695, %v127_v8 }
  0x2e   :  { %p236_p6 = pnand %p235_p5, %p229_p2 }
  0x2f   :  { %180 = vpow2.f32 %v128_v9 }
  0x39   :  { %v181_v10 = vpop.eup %180 }
  0x3a   :  { %v130_v11 = vadd.f32 1.0, %v181_v10  ;;  %v133_v12 = vmul.f32 -0.5, %v181_v10  ;;  %v136_v16 = vand.u32 2147483647, %v181_v10 }
  0x3c   :  { %182 = vlog2.f32 %v130_v11  ;;  %v134_v14 = vadd.f32 1.0, %v133_v12  ;;  %vm137_vm2 = vcmp.lt.f32.partialorder %v136_v16, 0.0004427343 }
  0x3e   :  { %v135_v20 = vmul.f32 %v181_v10, %v134_v14 }
  0x46   :  { %v183_v15 = vpop.eup %182 }
  0x47   :  { %v132_v19 = vmul.f32 0.6931472, %v183_v15 }
  0x49   :  { %v138_v22 = vsel %vm137_vm2, %v135_v20, %v132_v19 }
  0x4a   :  { %v139_v23 = vadd.f32 %v138_v22, %v125_v21 }
 0x100   :  { %v119_v24 = vpop.f32.mrb[0].mxu0 }
 0x101   :  { %v140_v25 = vmul.f32 %v139_v23, %v119_v24  ;;  %v168_v26 = vpop.f32.mrb[1].mxu0 }
 0x103   :  { %141 = vst [vmem:[#allocation7] sm:$0x3] %v140_v25 }
 0x104   :  { %239 = shalt.err (!%p236_p6)
}
 0x105   :  { %s240_s20 = scalar_lea.hbm %s342_s4, 32 }
 0x106   :  { %p241_p7 = scmp.ne.s32.totalorder %s342_s4, %s240_s20  ;;  %p244_p8 = scmp.lt.u32.totalorder %s240_s20, %s342_s4 }
 0x108   :  { %p246_p9 = pnand %p244_p8, %p241_p7 }
 0x10a   :  { %249 = shalt.err (!%p246_p9)
}
 0x10b   :  { %151 = dma.vmem_to_hbm [thread:$0]  %s149_s17, 32, %s342_s4, [#allocation4]  }
 0x10c   :  { %254 = dma.done.wait [#allocation4], 32  }
 0x10d   :  { %255 = vsyncadd [#allocation4], 4294967264 }
 0x10e   :  { %155 = vsyncpa [#allocation3], 1 }
 0x10f   :  { %156 = vsyncpa [#allocation6], 1 }
 0x110   :  { %157 = vsyncpa [#allocation4], 1 }

</bundles_post_ra>
